<compile_context>
chip_gen: v5e
topology: v5e:2x2
jax: 0.10.0
libtpu: 0.0.40
codegen_flags: <defaults>
</compile_context>

<pallas_src>
import functools

import jax
import jax.numpy as jnp
import numpy as np
from jax.experimental import pallas as pl
from jax.experimental.pallas import tpu as pltpu


def _qinv_res_kernel(x_ref, w1_ref, b1_ref, dwc_ref, dwl_ref, dwr_ref, b2_ref,
                     w3_ref, b3_ref, o_ref, *, use_res):
    x = x_ref[...]                       # (P*Cin, T): images stacked in sublanes
    cin = w1_ref.shape[0]
    hd = b1_ref.shape[0]
    pair = x.shape[0] // cin
    t = x.shape[1]

    dwl = dwl_ref[...]                   # (HD, T)  left tap * left-edge mask
    dwr = dwr_ref[...]                   # (HD, T)  right tap * right-edge mask
    dwc = dwc_ref[...]                   # (HD, 1)  center tap
    b1 = b1_ref[...]
    b2 = b2_ref[...]

    acc = None                           # (P*Cout, T) full-sublane accumulator
    for p in range(pair):
        # --- expand: 1x1 conv + folded BN + ReLU (Cin broadcast-FMAs, VPU) ---
        h = w1_ref[0] * x[p * cin:p * cin + 1, :]          # (HD,1)*(1,T)->(HD,T)
        for i in range(1, cin):
            h = h + w1_ref[i] * x[p * cin + i:p * cin + i + 1, :]
        h = jnp.maximum(h + b1, 0.0)                        # (HD, T)

        # --- depthwise [1,3] conv along W (pad=1) + folded BN + ReLU -------
        # Lanes are flattened (h, w); rolls (XLU) fetch the w-neighbors and the
        # image-row edges (and the block wraparound, since T % W == 0) are
        # killed by the masks pre-folded into dwl / dwr (no iota/cmp/select).
        left = pltpu.roll(h, 1, axis=1)                     # value at w-1
        right = pltpu.roll(h, t - 1, axis=1)                # value at w+1
        y = dwl * left + dwc * h + dwr * right
        y = jnp.maximum(y + b2, 0.0)                        # (HD, T)

        # --- project: 1x1 conv + folded BN (no ReLU). w3_ref[p] is zero-padded
        # so image p lands in sublanes [p*Cout, (p+1)*Cout): one full-vreg acc.
        for i in range(hd):
            term = w3_ref[p, i] * y[i:i + 1, :]             # (P*Cout, T)
            acc = term if acc is None else acc + term

    out = acc + b3_ref[...]                                 # (P*Cout, T)
    if use_res:
        out = out + x                                       # full-vreg residual
    o_ref[...] = out.astype(o_ref.dtype)


def qinverted_residual(x_nchw, params, *, use_res=True, lane_block=None):
    """x_nchw: (N, Cin, H, W) float32.  Returns (N, Cout, H, W)."""
    w1, b1, dw, b2, w3, b3 = params
    N, Cin, H, W = x_nchw.shape
    HD = b1.shape[0]
    Cout = b3.shape[0]
    HW = H * W
    if use_res:
        assert Cin == Cout, "residual path requires n_in == n_out"

    # Pack two batch images per grid step (free, row-major reshape).
    P = 2 if N % 2 == 0 else 1
    NP = N // P

    if lane_block is None:
        lane_block = HW
        # Keep >= 2 (parallel) grid steps so both v7x TensorCores get work.
        # On v5e/v6e pass lane_block=H*W explicitly for the single-step variant.
        if NP * (HW // lane_block) < 2:
            half = HW // 2
            if HW % 2 == 0 and half % W == 0 and half % 128 == 0:
                lane_block = half
    T = lane_block
    assert HW % T == 0, "lane_block must divide H*W"
    assert T % W == 0, "blocks must cover whole image rows"
    assert T == HW or T % 128 == 0, "lane dim must be 128-aligned or full"

    # Free, metadata-only reshape (NCHW contiguous): two images' channels stack
    # in the sublane axis; no transposes, no extra HBM passes.
    x3 = x_nchw.reshape(NP, P * Cin, HW)

    # Precompute the row-edge masks and fold them into the depthwise taps.
    w_pos = jnp.arange(HW, dtype=jnp.int32) % W
    ml = (w_pos != 0).astype(x3.dtype)
    mr = (w_pos != W - 1).astype(x3.dtype)
    dw_l = dw[0, :, 0][:, None] * ml[None, :]               # (HD, HW)
    dw_r = dw[2, :, 0][:, None] * mr[None, :]               # (HD, HW)
    dw_c = dw[1]                                            # (HD, 1)

    # Zero-padded per-image project weights: image p writes sublanes
    # [p*Cout, (p+1)*Cout) of a single full-sublane accumulator.
    if P == 2:
        z = jnp.zeros_like(w3)
        w3p = jnp.stack([jnp.concatenate([w3, z], axis=1),
                         jnp.concatenate([z, w3], axis=1)], axis=0)  # (2,HD,2Cout,1)
        b3p = jnp.concatenate([b3, b3], axis=0)                      # (2*Cout, 1)
    else:
        w3p = w3[None]                                               # (1,HD,Cout,1)
        b3p = b3

    kernel = functools.partial(_qinv_res_kernel, use_res=use_res)

    out3 = pl.pallas_call(
        kernel,
        out_shape=jax.ShapeDtypeStruct((NP, P * Cout, HW), x3.dtype),
        grid_spec=pltpu.PrefetchScalarGridSpec(
            num_scalar_prefetch=0,
            grid=(NP, HW // T),
            in_specs=[
                pl.BlockSpec((None, P * Cin, T), lambda n, t: (n, 0, t)),
                pl.BlockSpec((Cin, HD, 1), lambda n, t: (0, 0, 0)),
                pl.BlockSpec((HD, 1), lambda n, t: (0, 0)),
                pl.BlockSpec((HD, 1), lambda n, t: (0, 0)),          # dw center
                pl.BlockSpec((HD, T), lambda n, t: (0, t)),          # dw left*mask
                pl.BlockSpec((HD, T), lambda n, t: (0, t)),          # dw right*mask
                pl.BlockSpec((HD, 1), lambda n, t: (0, 0)),          # b2
                pl.BlockSpec((P, HD, P * Cout, 1), lambda n, t: (0, 0, 0, 0)),
                pl.BlockSpec((P * Cout, 1), lambda n, t: (0, 0)),
            ],
            out_specs=pl.BlockSpec((None, P * Cout, T), lambda n, t: (n, 0, t)),
        ),
        compiler_params=pltpu.CompilerParams(
            dimension_semantics=("parallel", "parallel"),
            vmem_limit_bytes=32 * 1024 * 1024),
    )(x3, w1, b1, dw_c, dw_l, dw_r, b2, w3p, b3p)

    return out3.reshape(N, Cout, H, W)


def make_params(key, n_in, n_out, expand_ratio, eps=1e-5):
    """Deterministic conv + BN params, with BN folded into the convs.

    Packaged channels-in-sublanes: each 1x1-conv input channel / depthwise tap
    becomes a (C_out_like, 1) column the kernel broadcasts across lanes.
    """
    hidden = int(round(n_in * expand_ratio))
    ks = jax.random.split(key, 16)

    # raw conv weights (PyTorch shapes squeezed of the [1,k] spatial dims)
    w1 = 0.2 * jax.random.normal(ks[0], (hidden, n_in), jnp.float32)   # (O, I)
    dw = 0.2 * jax.random.normal(ks[1], (hidden, 3), jnp.float32)      # (O, k)
    w3 = 0.2 * jax.random.normal(ks[2], (n_out, hidden), jnp.float32)  # (O, I)

    def bn(kg, kb, km, kv, c):
        gamma = 1.0 + 0.1 * jax.random.normal(kg, (c,), jnp.float32)
        beta = 0.1 * jax.random.normal(kb, (c,), jnp.float32)
        mean = 0.1 * jax.random.normal(km, (c,), jnp.float32)
        var = jnp.abs(jax.random.normal(kv, (c,), jnp.float32)) + 0.5
        scale = gamma / jnp.sqrt(var + eps)
        bias = beta - mean * scale
        return scale, bias

    s1, bb1 = bn(ks[3], ks[4], ks[5], ks[6], hidden)
    s2, bb2 = bn(ks[7], ks[8], ks[9], ks[10], hidden)
    s3, bb3 = bn(ks[11], ks[12], ks[13], ks[14], n_out)

    # fold BN scale into each conv's output channels, package as columns
    w1f = jnp.transpose(w1 * s1[:, None])[:, :, None]   # (Cin, HD, 1)
    dwf = jnp.transpose(dw * s2[:, None])[:, :, None]   # (3, HD, 1)
    w3f = jnp.transpose(w3 * s3[:, None])[:, :, None]   # (HD, Cout, 1)
    return (w1f, bb1[:, None], dwf, bb2[:, None], w3f, bb3[:, None])


def ref_forward(x_nchw, params):
    """Independent pure-JAX reference using lax convs (NCHW, like PyTorch)."""
    w1, b1, dw, b2, w3, b3 = params
    HD = b1.shape[0]
    hp = jax.lax.Precision.HIGHEST

    W1 = jnp.transpose(w1[..., 0])[:, :, None, None]            # (HD, Cin, 1, 1)
    h = jax.lax.conv_general_dilated(
        x_nchw, W1, (1, 1), 'VALID',
        dimension_numbers=('NCHW', 'OIHW', 'NCHW'), precision=hp)
    h = jnp.maximum(h + b1.reshape(1, -1, 1, 1), 0.0)

    DW = jnp.transpose(dw[..., 0])[:, None, None, :]             # (HD, 1, 1, 3)
    y = jax.lax.conv_general_dilated(
        h, DW, (1, 1), ((0, 0), (1, 1)),
        dimension_numbers=('NCHW', 'OIHW', 'NCHW'),
        feature_group_count=HD, precision=hp)
    y = jnp.maximum(y + b2.reshape(1, -1, 1, 1), 0.0)

    W3 = jnp.transpose(w3[..., 0])[:, :, None, None]             # (Cout, HD, 1, 1)
    out = jax.lax.conv_general_dilated(
        y, W3, (1, 1), 'VALID',
        dimension_numbers=('NCHW', 'OIHW', 'NCHW'), precision=hp)
    out = out + b3.reshape(1, -1, 1, 1)
    return x_nchw + out


if __name__ == "__main__":
    key = jax.random.PRNGKey(0)
    kx, kp = jax.random.split(key)

    # QInvertedResidual(n_in=4, n_out=4, stride=1, expand_ratio=2)
    #   -> hidden=8, use_res=True
    N, C, H, W = 2, 4, 16, 16
    x = jax.random.normal(kx, (N, C, H, W), jnp.float32)
    params = make_params(kp, n_in=C, n_out=C, expand_ratio=2)

    out = qinverted_residual(x, params, use_res=True)
    out = jax.block_until_ready(out)

    ref = jax.block_until_ready(ref_forward(x, params))
    np.testing.assert_allclose(np.asarray(out), np.asarray(ref),
                               rtol=1e-4, atol=1e-4)
    print("KERNEL_OK")
</pallas_src>

<mosaic_0001>
module attributes {stable_mosaic.version = 11 : i64} {
  func.func @_qinv_res_kernel(%arg0: i32, %arg1: i32, %arg2: memref<1x8x128xf32, #tpu.memory_space<vmem>>, %arg3: memref<4x8x1xf32, #tpu.memory_space<vmem>>, %arg4: memref<8x1xf32, #tpu.memory_space<vmem>>, %arg5: memref<8x1xf32, #tpu.memory_space<vmem>>, %arg6: memref<8x128xf32, #tpu.memory_space<vmem>>, %arg7: memref<8x128xf32, #tpu.memory_space<vmem>>, %arg8: memref<8x1xf32, #tpu.memory_space<vmem>>, %arg9: memref<2x8x8x1xf32, #tpu.memory_space<vmem>>, %arg10: memref<8x1xf32, #tpu.memory_space<vmem>>, %arg11: memref<1x8x128xf32, #tpu.memory_space<vmem>>) attributes {dimension_semantics = [#tpu.dimension_semantics<parallel>, #tpu.dimension_semantics<parallel>], iteration_bounds = array<i64: 1, 2>, scalar_prefetch = 0 : i64, scratch_operands = 0 : i64, tpu.core_type = #tpu.core_type<tc>, window_params = [{transform_indices = @transform_0, window_bounds = array<i64: 1, 8, 128>}, {pipeline_mode = #tpu.pipeline_mode<synchronous>, transform_indices = @transform_1, window_bounds = array<i64: 4, 8, 1>}, {pipeline_mode = #tpu.pipeline_mode<synchronous>, transform_indices = @transform_2, window_bounds = array<i64: 8, 1>}, {pipeline_mode = #tpu.pipeline_mode<synchronous>, transform_indices = @transform_3, window_bounds = array<i64: 8, 1>}, {transform_indices = @transform_4, window_bounds = array<i64: 8, 128>}, {transform_indices = @transform_5, window_bounds = array<i64: 8, 128>}, {pipeline_mode = #tpu.pipeline_mode<synchronous>, transform_indices = @transform_6, window_bounds = array<i64: 8, 1>}, {pipeline_mode = #tpu.pipeline_mode<synchronous>, transform_indices = @transform_7, window_bounds = array<i64: 2, 8, 8, 1>}, {pipeline_mode = #tpu.pipeline_mode<synchronous>, transform_indices = @transform_8, window_bounds = array<i64: 8, 1>}, {transform_indices = @transform_9, window_bounds = array<i64: 1, 8, 128>}]} {
    %c0 = arith.constant 0 : index
    %c0_0 = arith.constant 0 : index
    %c0_1 = arith.constant 0 : index
    %0 = vector.load %arg2[%c0, %c0_0, %c0_1] : memref<1x8x128xf32, #tpu.memory_space<vmem>>, vector<1x8x128xf32>
    %1 = vector.shape_cast %0 : vector<1x8x128xf32> to vector<8x128xf32>
    %c0_2 = arith.constant 0 : index
    %c0_3 = arith.constant 0 : index
    %2 = vector.load %arg6[%c0_2, %c0_3] : memref<8x128xf32, #tpu.memory_space<vmem>>, vector<8x128xf32>
    %c0_4 = arith.constant 0 : index
    %c0_5 = arith.constant 0 : index
    %3 = vector.load %arg7[%c0_4, %c0_5] : memref<8x128xf32, #tpu.memory_space<vmem>>, vector<8x128xf32>
    %c0_6 = arith.constant 0 : index
    %c0_7 = arith.constant 0 : index
    %4 = vector.load %arg5[%c0_6, %c0_7] : memref<8x1xf32, #tpu.memory_space<vmem>>, vector<8x1xf32>
    %c0_8 = arith.constant 0 : index
    %c0_9 = arith.constant 0 : index
    %5 = vector.load %arg4[%c0_8, %c0_9] : memref<8x1xf32, #tpu.memory_space<vmem>>, vector<8x1xf32>
    %c0_10 = arith.constant 0 : index
    %c0_11 = arith.constant 0 : index
    %6 = vector.load %arg8[%c0_10, %c0_11] : memref<8x1xf32, #tpu.memory_space<vmem>>, vector<8x1xf32>
    %c0_12 = arith.constant 0 : index
    %c0_13 = arith.constant 0 : index
    %c0_14 = arith.constant 0 : index
    %7 = vector.load %arg3[%c0_12, %c0_13, %c0_14] : memref<4x8x1xf32, #tpu.memory_space<vmem>>, vector<1x8x1xf32>
    %8 = vector.shape_cast %7 : vector<1x8x1xf32> to vector<8x1xf32>
    %9 = vector.extract_strided_slice %1 {offsets = [0, 0], sizes = [1, 128], strides = [1, 1]} : vector<8x128xf32> to vector<1x128xf32>
    %10 = vector.broadcast %8 : vector<8x1xf32> to vector<8x128xf32>
    %11 = vector.broadcast %9 : vector<1x128xf32> to vector<8x128xf32>
    %12 = arith.mulf %10, %11 : vector<8x128xf32>
    %c1 = arith.constant 1 : index
    %c0_15 = arith.constant 0 : index
    %c0_16 = arith.constant 0 : index
    %13 = vector.load %arg3[%c1, %c0_15, %c0_16] : memref<4x8x1xf32, #tpu.memory_space<vmem>>, vector<1x8x1xf32>
    %14 = vector.shape_cast %13 : vector<1x8x1xf32> to vector<8x1xf32>
    %15 = vector.extract_strided_slice %1 {offsets = [1, 0], sizes = [1, 128], strides = [1, 1]} : vector<8x128xf32> to vector<1x128xf32>
    %16 = vector.broadcast %14 : vector<8x1xf32> to vector<8x128xf32>
    %17 = vector.broadcast %15 : vector<1x128xf32> to vector<8x128xf32>
    %18 = arith.mulf %16, %17 : vector<8x128xf32>
    %19 = arith.addf %12, %18 : vector<8x128xf32>
    %c2 = arith.constant 2 : index
    %c0_17 = arith.constant 0 : index
    %c0_18 = arith.constant 0 : index
    %20 = vector.load %arg3[%c2, %c0_17, %c0_18] : memref<4x8x1xf32, #tpu.memory_space<vmem>>, vector<1x8x1xf32>
    %21 = vector.shape_cast %20 : vector<1x8x1xf32> to vector<8x1xf32>
    %22 = vector.extract_strided_slice %1 {offsets = [2, 0], sizes = [1, 128], strides = [1, 1]} : vector<8x128xf32> to vector<1x128xf32>
    %23 = vector.broadcast %21 : vector<8x1xf32> to vector<8x128xf32>
    %24 = vector.broadcast %22 : vector<1x128xf32> to vector<8x128xf32>
    %25 = arith.mulf %23, %24 : vector<8x128xf32>
    %26 = arith.addf %19, %25 : vector<8x128xf32>
    %c3 = arith.constant 3 : index
    %c0_19 = arith.constant 0 : index
    %c0_20 = arith.constant 0 : index
    %27 = vector.load %arg3[%c3, %c0_19, %c0_20] : memref<4x8x1xf32, #tpu.memory_space<vmem>>, vector<1x8x1xf32>
    %28 = vector.shape_cast %27 : vector<1x8x1xf32> to vector<8x1xf32>
    %29 = vector.extract_strided_slice %1 {offsets = [3, 0], sizes = [1, 128], strides = [1, 1]} : vector<8x128xf32> to vector<1x128xf32>
    %30 = vector.broadcast %28 : vector<8x1xf32> to vector<8x128xf32>
    %31 = vector.broadcast %29 : vector<1x128xf32> to vector<8x128xf32>
    %32 = arith.mulf %30, %31 : vector<8x128xf32>
    %33 = arith.addf %26, %32 : vector<8x128xf32>
    %34 = vector.broadcast %5 : vector<8x1xf32> to vector<8x128xf32>
    %35 = arith.addf %33, %34 : vector<8x128xf32>
    %cst = arith.constant 0.000000e+00 : f32
    %36 = vector.broadcast %cst : f32 to vector<8x128xf32>
    %37 = arith.maximumf %35, %36 : vector<8x128xf32>
    %c1_i32 = arith.constant 1 : i32
    %38 = tpu.dynamic_rotate %37 by %c1_i32 dim 1 : vector<8x128xf32>, i32 -> vector<8x128xf32>
    %c127_i32 = arith.constant 127 : i32
    %39 = tpu.dynamic_rotate %37 by %c127_i32 dim 1 : vector<8x128xf32>, i32 -> vector<8x128xf32>
    %40 = arith.mulf %2, %38 : vector<8x128xf32>
    %41 = vector.broadcast %4 : vector<8x1xf32> to vector<8x128xf32>
    %42 = arith.mulf %41, %37 : vector<8x128xf32>
    %43 = arith.addf %40, %42 : vector<8x128xf32>
    %44 = arith.mulf %3, %39 : vector<8x128xf32>
    %45 = arith.addf %43, %44 : vector<8x128xf32>
    %46 = vector.broadcast %6 : vector<8x1xf32> to vector<8x128xf32>
    %47 = arith.addf %45, %46 : vector<8x128xf32>
    %cst_21 = arith.constant 0.000000e+00 : f32
    %48 = vector.broadcast %cst_21 : f32 to vector<8x128xf32>
    %49 = arith.maximumf %47, %48 : vector<8x128xf32>
    %c0_22 = arith.constant 0 : index
    %c0_23 = arith.constant 0 : index
    %c0_24 = arith.constant 0 : index
    %c0_25 = arith.constant 0 : index
    %50 = vector.load %arg9[%c0_22, %c0_23, %c0_24, %c0_25] : memref<2x8x8x1xf32, #tpu.memory_space<vmem>>, vector<1x1x8x1xf32>
    %51 = vector.shape_cast %50 : vector<1x1x8x1xf32> to vector<8x1xf32>
    %52 = vector.extract_strided_slice %49 {offsets = [0, 0], sizes = [1, 128], strides = [1, 1]} : vector<8x128xf32> to vector<1x128xf32>
    %53 = vector.broadcast %51 : vector<8x1xf32> to vector<8x128xf32>
    %54 = vector.broadcast %52 : vector<1x128xf32> to vector<8x128xf32>
    %55 = arith.mulf %53, %54 : vector<8x128xf32>
    %c0_26 = arith.constant 0 : index
    %c1_27 = arith.constant 1 : index
    %c0_28 = arith.constant 0 : index
    %c0_29 = arith.constant 0 : index
    %56 = vector.load %arg9[%c0_26, %c1_27, %c0_28, %c0_29] : memref<2x8x8x1xf32, #tpu.memory_space<vmem>>, vector<1x1x8x1xf32>
    %57 = vector.shape_cast %56 : vector<1x1x8x1xf32> to vector<8x1xf32>
    %58 = vector.extract_strided_slice %49 {offsets = [1, 0], sizes = [1, 128], strides = [1, 1]} : vector<8x128xf32> to vector<1x128xf32>
    %59 = vector.broadcast %57 : vector<8x1xf32> to vector<8x128xf32>
    %60 = vector.broadcast %58 : vector<1x128xf32> to vector<8x128xf32>
    %61 = arith.mulf %59, %60 : vector<8x128xf32>
    %62 = arith.addf %55, %61 : vector<8x128xf32>
    %c0_30 = arith.constant 0 : index
    %c2_31 = arith.constant 2 : index
    %c0_32 = arith.constant 0 : index
    %c0_33 = arith.constant 0 : index
    %63 = vector.load %arg9[%c0_30, %c2_31, %c0_32, %c0_33] : memref<2x8x8x1xf32, #tpu.memory_space<vmem>>, vector<1x1x8x1xf32>
    %64 = vector.shape_cast %63 : vector<1x1x8x1xf32> to vector<8x1xf32>
    %65 = vector.extract_strided_slice %49 {offsets = [2, 0], sizes = [1, 128], strides = [1, 1]} : vector<8x128xf32> to vector<1x128xf32>
    %66 = vector.broadcast %64 : vector<8x1xf32> to vector<8x128xf32>
    %67 = vector.broadcast %65 : vector<1x128xf32> to vector<8x128xf32>
    %68 = arith.mulf %66, %67 : vector<8x128xf32>
    %69 = arith.addf %62, %68 : vector<8x128xf32>
    %c0_34 = arith.constant 0 : index
    %c3_35 = arith.constant 3 : index
    %c0_36 = arith.constant 0 : index
    %c0_37 = arith.constant 0 : index
    %70 = vector.load %arg9[%c0_34, %c3_35, %c0_36, %c0_37] : memref<2x8x8x1xf32, #tpu.memory_space<vmem>>, vector<1x1x8x1xf32>
    %71 = vector.shape_cast %70 : vector<1x1x8x1xf32> to vector<8x1xf32>
    %72 = vector.extract_strided_slice %49 {offsets = [3, 0], sizes = [1, 128], strides = [1, 1]} : vector<8x128xf32> to vector<1x128xf32>
    %73 = vector.broadcast %71 : vector<8x1xf32> to vector<8x128xf32>
    %74 = vector.broadcast %72 : vector<1x128xf32> to vector<8x128xf32>
    %75 = arith.mulf %73, %74 : vector<8x128xf32>
    %76 = arith.addf %69, %75 : vector<8x128xf32>
    %c0_38 = arith.constant 0 : index
    %c4 = arith.constant 4 : index
    %c0_39 = arith.constant 0 : index
    %c0_40 = arith.constant 0 : index
    %77 = vector.load %arg9[%c0_38, %c4, %c0_39, %c0_40] : memref<2x8x8x1xf32, #tpu.memory_space<vmem>>, vector<1x1x8x1xf32>
    %78 = vector.shape_cast %77 : vector<1x1x8x1xf32> to vector<8x1xf32>
    %79 = vector.extract_strided_slice %49 {offsets = [4, 0], sizes = [1, 128], strides = [1, 1]} : vector<8x128xf32> to vector<1x128xf32>
    %80 = vector.broadcast %78 : vector<8x1xf32> to vector<8x128xf32>
    %81 = vector.broadcast %79 : vector<1x128xf32> to vector<8x128xf32>
    %82 = arith.mulf %80, %81 : vector<8x128xf32>
    %83 = arith.addf %76, %82 : vector<8x128xf32>
    %c0_41 = arith.constant 0 : index
    %c5 = arith.constant 5 : index
    %c0_42 = arith.constant 0 : index
    %c0_43 = arith.constant 0 : index
    %84 = vector.load %arg9[%c0_41, %c5, %c0_42, %c0_43] : memref<2x8x8x1xf32, #tpu.memory_space<vmem>>, vector<1x1x8x1xf32>
    %85 = vector.shape_cast %84 : vector<1x1x8x1xf32> to vector<8x1xf32>
    %86 = vector.extract_strided_slice %49 {offsets = [5, 0], sizes = [1, 128], strides = [1, 1]} : vector<8x128xf32> to vector<1x128xf32>
    %87 = vector.broadcast %85 : vector<8x1xf32> to vector<8x128xf32>
    %88 = vector.broadcast %86 : vector<1x128xf32> to vector<8x128xf32>
    %89 = arith.mulf %87, %88 : vector<8x128xf32>
    %90 = arith.addf %83, %89 : vector<8x128xf32>
    %c0_44 = arith.constant 0 : index
    %c6 = arith.constant 6 : index
    %c0_45 = arith.constant 0 : index
    %c0_46 = arith.constant 0 : index
    %91 = vector.load %arg9[%c0_44, %c6, %c0_45, %c0_46] : memref<2x8x8x1xf32, #tpu.memory_space<vmem>>, vector<1x1x8x1xf32>
    %92 = vector.shape_cast %91 : vector<1x1x8x1xf32> to vector<8x1xf32>
    %93 = vector.extract_strided_slice %49 {offsets = [6, 0], sizes = [1, 128], strides = [1, 1]} : vector<8x128xf32> to vector<1x128xf32>
    %94 = vector.broadcast %92 : vector<8x1xf32> to vector<8x128xf32>
    %95 = vector.broadcast %93 : vector<1x128xf32> to vector<8x128xf32>
    %96 = arith.mulf %94, %95 : vector<8x128xf32>
    %97 = arith.addf %90, %96 : vector<8x128xf32>
    %c0_47 = arith.constant 0 : index
    %c7 = arith.constant 7 : index
    %c0_48 = arith.constant 0 : index
    %c0_49 = arith.constant 0 : index
    %98 = vector.load %arg9[%c0_47, %c7, %c0_48, %c0_49] : memref<2x8x8x1xf32, #tpu.memory_space<vmem>>, vector<1x1x8x1xf32>
    %99 = vector.shape_cast %98 : vector<1x1x8x1xf32> to vector<8x1xf32>
    %100 = vector.extract_strided_slice %49 {offsets = [7, 0], sizes = [1, 128], strides = [1, 1]} : vector<8x128xf32> to vector<1x128xf32>
    %101 = vector.broadcast %99 : vector<8x1xf32> to vector<8x128xf32>
    %102 = vector.broadcast %100 : vector<1x128xf32> to vector<8x128xf32>
    %103 = arith.mulf %101, %102 : vector<8x128xf32>
    %104 = arith.addf %97, %103 : vector<8x128xf32>
    %c0_50 = arith.constant 0 : index
    %c0_51 = arith.constant 0 : index
    %c0_52 = arith.constant 0 : index
    %105 = vector.load %arg3[%c0_50, %c0_51, %c0_52] : memref<4x8x1xf32, #tpu.memory_space<vmem>>, vector<1x8x1xf32>
    %106 = vector.shape_cast %105 : vector<1x8x1xf32> to vector<8x1xf32>
    %107 = vector.extract_strided_slice %1 {offsets = [4, 0], sizes = [1, 128], strides = [1, 1]} : vector<8x128xf32> to vector<1x128xf32>
    %108 = vector.broadcast %106 : vector<8x1xf32> to vector<8x128xf32>
    %109 = vector.broadcast %107 : vector<1x128xf32> to vector<8x128xf32>
    %110 = arith.mulf %108, %109 : vector<8x128xf32>
    %c1_53 = arith.constant 1 : index
    %c0_54 = arith.constant 0 : index
    %c0_55 = arith.constant 0 : index
    %111 = vector.load %arg3[%c1_53, %c0_54, %c0_55] : memref<4x8x1xf32, #tpu.memory_space<vmem>>, vector<1x8x1xf32>
    %112 = vector.shape_cast %111 : vector<1x8x1xf32> to vector<8x1xf32>
    %113 = vector.extract_strided_slice %1 {offsets = [5, 0], sizes = [1, 128], strides = [1, 1]} : vector<8x128xf32> to vector<1x128xf32>
    %114 = vector.broadcast %112 : vector<8x1xf32> to vector<8x128xf32>
    %115 = vector.broadcast %113 : vector<1x128xf32> to vector<8x128xf32>
    %116 = arith.mulf %114, %115 : vector<8x128xf32>
    %117 = arith.addf %110, %116 : vector<8x128xf32>
    %c2_56 = arith.constant 2 : index
    %c0_57 = arith.constant 0 : index
    %c0_58 = arith.constant 0 : index
    %118 = vector.load %arg3[%c2_56, %c0_57, %c0_58] : memref<4x8x1xf32, #tpu.memory_space<vmem>>, vector<1x8x1xf32>
    %119 = vector.shape_cast %118 : vector<1x8x1xf32> to vector<8x1xf32>
    %120 = vector.extract_strided_slice %1 {offsets = [6, 0], sizes = [1, 128], strides = [1, 1]} : vector<8x128xf32> to vector<1x128xf32>
    %121 = vector.broadcast %119 : vector<8x1xf32> to vector<8x128xf32>
    %122 = vector.broadcast %120 : vector<1x128xf32> to vector<8x128xf32>
    %123 = arith.mulf %121, %122 : vector<8x128xf32>
    %124 = arith.addf %117, %123 : vector<8x128xf32>
    %c3_59 = arith.constant 3 : index
    %c0_60 = arith.constant 0 : index
    %c0_61 = arith.constant 0 : index
    %125 = vector.load %arg3[%c3_59, %c0_60, %c0_61] : memref<4x8x1xf32, #tpu.memory_space<vmem>>, vector<1x8x1xf32>
    %126 = vector.shape_cast %125 : vector<1x8x1xf32> to vector<8x1xf32>
    %127 = vector.extract_strided_slice %1 {offsets = [7, 0], sizes = [1, 128], strides = [1, 1]} : vector<8x128xf32> to vector<1x128xf32>
    %128 = vector.broadcast %126 : vector<8x1xf32> to vector<8x128xf32>
    %129 = vector.broadcast %127 : vector<1x128xf32> to vector<8x128xf32>
    %130 = arith.mulf %128, %129 : vector<8x128xf32>
    %131 = arith.addf %124, %130 : vector<8x128xf32>
    %132 = vector.broadcast %5 : vector<8x1xf32> to vector<8x128xf32>
    %133 = arith.addf %131, %132 : vector<8x128xf32>
    %cst_62 = arith.constant 0.000000e+00 : f32
    %134 = vector.broadcast %cst_62 : f32 to vector<8x128xf32>
    %135 = arith.maximumf %133, %134 : vector<8x128xf32>
    %c1_i32_63 = arith.constant 1 : i32
    %136 = tpu.dynamic_rotate %135 by %c1_i32_63 dim 1 : vector<8x128xf32>, i32 -> vector<8x128xf32>
    %c127_i32_64 = arith.constant 127 : i32
    %137 = tpu.dynamic_rotate %135 by %c127_i32_64 dim 1 : vector<8x128xf32>, i32 -> vector<8x128xf32>
    %138 = arith.mulf %2, %136 : vector<8x128xf32>
    %139 = vector.broadcast %4 : vector<8x1xf32> to vector<8x128xf32>
    %140 = arith.mulf %139, %135 : vector<8x128xf32>
    %141 = arith.addf %138, %140 : vector<8x128xf32>
    %142 = arith.mulf %3, %137 : vector<8x128xf32>
    %143 = arith.addf %141, %142 : vector<8x128xf32>
    %144 = vector.broadcast %6 : vector<8x1xf32> to vector<8x128xf32>
    %145 = arith.addf %143, %144 : vector<8x128xf32>
    %cst_65 = arith.constant 0.000000e+00 : f32
    %146 = vector.broadcast %cst_65 : f32 to vector<8x128xf32>
    %147 = arith.maximumf %145, %146 : vector<8x128xf32>
    %c1_66 = arith.constant 1 : index
    %c0_67 = arith.constant 0 : index
    %c0_68 = arith.constant 0 : index
    %c0_69 = arith.constant 0 : index
    %148 = vector.load %arg9[%c1_66, %c0_67, %c0_68, %c0_69] : memref<2x8x8x1xf32, #tpu.memory_space<vmem>>, vector<1x1x8x1xf32>
    %149 = vector.shape_cast %148 : vector<1x1x8x1xf32> to vector<8x1xf32>
    %150 = vector.extract_strided_slice %147 {offsets = [0, 0], sizes = [1, 128], strides = [1, 1]} : vector<8x128xf32> to vector<1x128xf32>
    %151 = vector.broadcast %149 : vector<8x1xf32> to vector<8x128xf32>
    %152 = vector.broadcast %150 : vector<1x128xf32> to vector<8x128xf32>
    %153 = arith.mulf %151, %152 : vector<8x128xf32>
    %154 = arith.addf %104, %153 : vector<8x128xf32>
    %c1_70 = arith.constant 1 : index
    %c1_71 = arith.constant 1 : index
    %c0_72 = arith.constant 0 : index
    %c0_73 = arith.constant 0 : index
    %155 = vector.load %arg9[%c1_70, %c1_71, %c0_72, %c0_73] : memref<2x8x8x1xf32, #tpu.memory_space<vmem>>, vector<1x1x8x1xf32>
    %156 = vector.shape_cast %155 : vector<1x1x8x1xf32> to vector<8x1xf32>
    %157 = vector.extract_strided_slice %147 {offsets = [1, 0], sizes = [1, 128], strides = [1, 1]} : vector<8x128xf32> to vector<1x128xf32>
    %158 = vector.broadcast %156 : vector<8x1xf32> to vector<8x128xf32>
    %159 = vector.broadcast %157 : vector<1x128xf32> to vector<8x128xf32>
    %160 = arith.mulf %158, %159 : vector<8x128xf32>
    %161 = arith.addf %154, %160 : vector<8x128xf32>
    %c1_74 = arith.constant 1 : index
    %c2_75 = arith.constant 2 : index
    %c0_76 = arith.constant 0 : index
    %c0_77 = arith.constant 0 : index
    %162 = vector.load %arg9[%c1_74, %c2_75, %c0_76, %c0_77] : memref<2x8x8x1xf32, #tpu.memory_space<vmem>>, vector<1x1x8x1xf32>
    %163 = vector.shape_cast %162 : vector<1x1x8x1xf32> to vector<8x1xf32>
    %164 = vector.extract_strided_slice %147 {offsets = [2, 0], sizes = [1, 128], strides = [1, 1]} : vector<8x128xf32> to vector<1x128xf32>
    %165 = vector.broadcast %163 : vector<8x1xf32> to vector<8x128xf32>
    %166 = vector.broadcast %164 : vector<1x128xf32> to vector<8x128xf32>
    %167 = arith.mulf %165, %166 : vector<8x128xf32>
    %168 = arith.addf %161, %167 : vector<8x128xf32>
    %c1_78 = arith.constant 1 : index
    %c3_79 = arith.constant 3 : index
    %c0_80 = arith.constant 0 : index
    %c0_81 = arith.constant 0 : index
    %169 = vector.load %arg9[%c1_78, %c3_79, %c0_80, %c0_81] : memref<2x8x8x1xf32, #tpu.memory_space<vmem>>, vector<1x1x8x1xf32>
    %170 = vector.shape_cast %169 : vector<1x1x8x1xf32> to vector<8x1xf32>
    %171 = vector.extract_strided_slice %147 {offsets = [3, 0], sizes = [1, 128], strides = [1, 1]} : vector<8x128xf32> to vector<1x128xf32>
    %172 = vector.broadcast %170 : vector<8x1xf32> to vector<8x128xf32>
    %173 = vector.broadcast %171 : vector<1x128xf32> to vector<8x128xf32>
    %174 = arith.mulf %172, %173 : vector<8x128xf32>
    %175 = arith.addf %168, %174 : vector<8x128xf32>
    %c1_82 = arith.constant 1 : index
    %c4_83 = arith.constant 4 : index
    %c0_84 = arith.constant 0 : index
    %c0_85 = arith.constant 0 : index
    %176 = vector.load %arg9[%c1_82, %c4_83, %c0_84, %c0_85] : memref<2x8x8x1xf32, #tpu.memory_space<vmem>>, vector<1x1x8x1xf32>
    %177 = vector.shape_cast %176 : vector<1x1x8x1xf32> to vector<8x1xf32>
    %178 = vector.extract_strided_slice %147 {offsets = [4, 0], sizes = [1, 128], strides = [1, 1]} : vector<8x128xf32> to vector<1x128xf32>
    %179 = vector.broadcast %177 : vector<8x1xf32> to vector<8x128xf32>
    %180 = vector.broadcast %178 : vector<1x128xf32> to vector<8x128xf32>
    %181 = arith.mulf %179, %180 : vector<8x128xf32>
    %182 = arith.addf %175, %181 : vector<8x128xf32>
    %c1_86 = arith.constant 1 : index
    %c5_87 = arith.constant 5 : index
    %c0_88 = arith.constant 0 : index
    %c0_89 = arith.constant 0 : index
    %183 = vector.load %arg9[%c1_86, %c5_87, %c0_88, %c0_89] : memref<2x8x8x1xf32, #tpu.memory_space<vmem>>, vector<1x1x8x1xf32>
    %184 = vector.shape_cast %183 : vector<1x1x8x1xf32> to vector<8x1xf32>
    %185 = vector.extract_strided_slice %147 {offsets = [5, 0], sizes = [1, 128], strides = [1, 1]} : vector<8x128xf32> to vector<1x128xf32>
    %186 = vector.broadcast %184 : vector<8x1xf32> to vector<8x128xf32>
    %187 = vector.broadcast %185 : vector<1x128xf32> to vector<8x128xf32>
    %188 = arith.mulf %186, %187 : vector<8x128xf32>
    %189 = arith.addf %182, %188 : vector<8x128xf32>
    %c1_90 = arith.constant 1 : index
    %c6_91 = arith.constant 6 : index
    %c0_92 = arith.constant 0 : index
    %c0_93 = arith.constant 0 : index
    %190 = vector.load %arg9[%c1_90, %c6_91, %c0_92, %c0_93] : memref<2x8x8x1xf32, #tpu.memory_space<vmem>>, vector<1x1x8x1xf32>
    %191 = vector.shape_cast %190 : vector<1x1x8x1xf32> to vector<8x1xf32>
    %192 = vector.extract_strided_slice %147 {offsets = [6, 0], sizes = [1, 128], strides = [1, 1]} : vector<8x128xf32> to vector<1x128xf32>
    %193 = vector.broadcast %191 : vector<8x1xf32> to vector<8x128xf32>
    %194 = vector.broadcast %192 : vector<1x128xf32> to vector<8x128xf32>
    %195 = arith.mulf %193, %194 : vector<8x128xf32>
    %196 = arith.addf %189, %195 : vector<8x128xf32>
    %c1_94 = arith.constant 1 : index
    %c7_95 = arith.constant 7 : index
    %c0_96 = arith.constant 0 : index
    %c0_97 = arith.constant 0 : index
    %197 = vector.load %arg9[%c1_94, %c7_95, %c0_96, %c0_97] : memref<2x8x8x1xf32, #tpu.memory_space<vmem>>, vector<1x1x8x1xf32>
    %198 = vector.shape_cast %197 : vector<1x1x8x1xf32> to vector<8x1xf32>
    %199 = vector.extract_strided_slice %147 {offsets = [7, 0], sizes = [1, 128], strides = [1, 1]} : vector<8x128xf32> to vector<1x128xf32>
    %200 = vector.broadcast %198 : vector<8x1xf32> to vector<8x128xf32>
    %201 = vector.broadcast %199 : vector<1x128xf32> to vector<8x128xf32>
    %202 = arith.mulf %200, %201 : vector<8x128xf32>
    %203 = arith.addf %196, %202 : vector<8x128xf32>
    %c0_98 = arith.constant 0 : index
    %c0_99 = arith.constant 0 : index
    %204 = vector.load %arg10[%c0_98, %c0_99] : memref<8x1xf32, #tpu.memory_space<vmem>>, vector<8x1xf32>
    %205 = vector.broadcast %204 : vector<8x1xf32> to vector<8x128xf32>
    %206 = arith.addf %203, %205 : vector<8x128xf32>
    %207 = arith.addf %206, %1 : vector<8x128xf32>
    %c0_100 = arith.constant 0 : index
    %c0_101 = arith.constant 0 : index
    %c0_102 = arith.constant 0 : index
    %208 = vector.load %arg11[%c0_100, %c0_101, %c0_102] : memref<1x8x128xf32, #tpu.memory_space<vmem>>, vector<1x8x128xf32>
    %209 = vector.shape_cast %208 : vector<1x8x128xf32> to vector<8x128xf32>
    %210 = vector.shape_cast %207 : vector<8x128xf32> to vector<1x8x128xf32>
    tpu.vector_store %arg11[%c0_100, %c0_101, %c0_102], %210 {strides = array<i32>} : memref<1x8x128xf32, #tpu.memory_space<vmem>>, vector<1x8x128xf32>,
    return
  }
  func.func @transform_0(%arg0: i32, %arg1: i32) -> (i32, i32, i32) {
    %c0_i32 = arith.constant 0 : i32
    %c0_i32_0 = arith.constant 0 : i32
    return %arg0, %c0_i32, %arg1 : i32, i32, i32
  }
  func.func @transform_1(%arg0: i32, %arg1: i32) -> (i32, i32, i32) {
    %c0_i32 = arith.constant 0 : i32
    %c0_i32_0 = arith.constant 0 : i32
    %c0_i32_1 = arith.constant 0 : i32
    %c0_i32_2 = arith.constant 0 : i32
    return %c0_i32, %c0_i32_0, %c0_i32_1 : i32, i32, i32
  }
  func.func @transform_2(%arg0: i32, %arg1: i32) -> (i32, i32) {
    %c0_i32 = arith.constant 0 : i32
    %c0_i32_0 = arith.constant 0 : i32
    %c0_i32_1 = arith.constant 0 : i32
    return %c0_i32, %c0_i32_0 : i32, i32
  }
  func.func @transform_3(%arg0: i32, %arg1: i32) -> (i32, i32) {
    %c0_i32 = arith.constant 0 : i32
    %c0_i32_0 = arith.constant 0 : i32
    %c0_i32_1 = arith.constant 0 : i32
    return %c0_i32, %c0_i32_0 : i32, i32
  }
  func.func @transform_4(%arg0: i32, %arg1: i32) -> (i32, i32) {
    %c0_i32 = arith.constant 0 : i32
    %c0_i32_0 = arith.constant 0 : i32
    return %c0_i32, %arg1 : i32, i32
  }
  func.func @transform_5(%arg0: i32, %arg1: i32) -> (i32, i32) {
    %c0_i32 = arith.constant 0 : i32
    %c0_i32_0 = arith.constant 0 : i32
    return %c0_i32, %arg1 : i32, i32
  }
  func.func @transform_6(%arg0: i32, %arg1: i32) -> (i32, i32) {
    %c0_i32 = arith.constant 0 : i32
    %c0_i32_0 = arith.constant 0 : i32
    %c0_i32_1 = arith.constant 0 : i32
    return %c0_i32, %c0_i32_0 : i32, i32
  }
  func.func @transform_7(%arg0: i32, %arg1: i32) -> (i32, i32, i32, i32) {
    %c0_i32 = arith.constant 0 : i32
    %c0_i32_0 = arith.constant 0 : i32
    %c0_i32_1 = arith.constant 0 : i32
    %c0_i32_2 = arith.constant 0 : i32
    %c0_i32_3 = arith.constant 0 : i32
    return %c0_i32, %c0_i32_0, %c0_i32_1, %c0_i32_2 : i32, i32, i32, i32
  }
  func.func @transform_8(%arg0: i32, %arg1: i32) -> (i32, i32) {
    %c0_i32 = arith.constant 0 : i32
    %c0_i32_0 = arith.constant 0 : i32
    %c0_i32_1 = arith.constant 0 : i32
    return %c0_i32, %c0_i32_0 : i32, i32
  }
  func.func @transform_9(%arg0: i32, %arg1: i32) -> (i32, i32, i32) {
    %c0_i32 = arith.constant 0 : i32
    %c0_i32_0 = arith.constant 0 : i32
    return %arg0, %c0_i32, %arg1 : i32, i32, i32
  }
}

</mosaic_0001>

<bundles_post_ra>
// kernel: tpu_custom_call.1
= control target key start
LH: loop header
LB: loop body
LE: loop exit
PB: predicated region body
PF: predicated region fallthrough
CT: control target
= control target key end

     0   :  { %s1191_s0 = inlined_call_operand.vmem [shape: f32[1,8,256], index: 0, kind: input, shape index: {}]   ;;  %s1192_s1 = inlined_call_operand.vmem [shape: f32[4,8,1], index: 1, kind: input, shape index: {}]   ;;  %s1193_s2 = inlined_call_operand.vmem [shape: f32[8,1], index: 2, kind: input, shape index: {}]   ;;  %s1194_s3 = inlined_call_operand.vmem [shape: f32[8,1], index: 3, kind: input, shape index: {}]   ;;  %s1195_s4 = inlined_call_operand.vmem [shape: f32[8,256], index: 4, kind: input, shape index: {}]   ;;  %s1196_s5 = inlined_call_operand.vmem [shape: f32[8,256], index: 5, kind: input, shape index: {}]   ;;  %s1197_s6 = inlined_call_operand.vmem [shape: f32[8,1], index: 6, kind: input, shape index: {}]   ;;  %s1198_s7 = inlined_call_operand.vmem [shape: f32[2,8,8,1], index: 7, kind: input, shape index: {}]   ;;  %s1199_s8 = inlined_call_operand.vmem [shape: f32[8,1], index: 8, kind: input, shape index: {}]   ;;  %s1200_s9 = inlined_call_operand.hbm [shape: f32[1,8,256], index: 9, kind: output, shape index: {}]  }
   0x1   :  { %1201 = sst [smem:[#allocation5_spill]] %s1191_s0 }
   0x2   :  { %14 = vsyncpa [#allocation3], 0 }
   0x3   :  { %16 = vsyncpa [#allocation3 + $0x1], 0  ;;  %s995_s30 = smov 0   ;;  %s997_s10 = smov 0  }
   0x4   :  { %s999_s11 = smov 0   ;;  %s1001_s12 = smov 0  }
   0x5   :  { %s1003_s13 = smov 0   ;;  %s1005_s14 = smov 0  }
   0x6 LB: > { %s770_s15 = sadd.s32 4294967295, %s940_s14   ;;  %s771_s16 = sadd.s32 4294967294, %s940_s14   ;;  %s940_s14 = sphi %s1005_s14, %s22_s14   ;;  %s936_s13 = sphi %s1003_s13, %s1209_s13   ;;  %s932_s12 = sphi %s1001_s12, %s1208_s12   ;;  %s928_s11 = sphi %s999_s11, %s1207_s11   ;;  %s924_s10 = sphi %s997_s10, %s1206_s10   ;;  %s920_s30 = sphi %s995_s30, %s1205_s30  }
   0x7   : > { %s31_s17 = sadd.s32 1, %s936_s13  ;;  %s249_s18 = sadd.s32 1, %s928_s11 }
   0x8   : > { %p32_p0 = scmp.ge.s32.totalorder %s31_s17, 2  ;;  %p259_p1 = scmp.ne.s32.totalorder %s928_s11, %s924_s10 }
   0x9   : > { %p260_p2 = scmp.eq.s32.totalorder %s770_s15, 1  ;;  %p265_p3 = scmp.ne.s32.totalorder %s924_s10, %s920_s30 }
   0xa   : > { %s1211_s17 = smov (%p32_p0, %s31_s17), 0  ;;  %p266_p5 = scmp.eq.s32.totalorder %s771_s16, 1 }
   0xb   : > { %p1035_p4 = por %p260_p2, %p259_p1  ;;  %s245_s20 = ssub.s32 %s936_s13, %s1211_s17 }
   0xc   : > { %p774_p6 = scmp.ge.s32.totalorder %s940_s14, 1  ;;  %p247_p7 = scmp.eq.s32.totalorder %s245_s20, 0 }
   0xd   : > { %p1042_p8 = por %p266_p5, %p265_p3  ;;  %p327_p9 = scmp.lt.s32.totalorder %s940_s14, 3 }
   0xe   : > { %s1048_s22 = scalar_select %p247_p7, %s928_s11, %s249_s18  }
   0xf   : > { %p328_p10 = pnand %p774_p6, %p327_p9 }
  0x10   : > { %p376_p11 = scmp.lt.s32.totalorder (!%p328_p10), %s932_s12, 1  ;;  %s1204_s0 = sld [smem:[#allocation5_spill]] (!%p328_p10) }
  0x11   : > { %331 = sbr.rel (%p328_p10) target bundleno = 329 (0x149), region = 56  ;;  %s943_s28 = smov (!%p328_p10), 127  }
  0x12   : > { %s944_s29 = smov (!%p328_p10), 1   ;;  %s798_s16 = sshll.u32 (!%p328_p10), %s932_s12, 3 }
  0x16   : > { %v780_v0 = vld [vmem:[%s1192_s1 + $0x10] sm:$0xff]  ;;  %v396_v1 = vld [vmem:[%s1192_s1] sm:$0xff]  ;;  %v942_v2 = vmov 0   ;;  %v781_v4 = vld [vmem:[%s1192_s1 + $0x18] sm:$0xff]  ;;  %s377_s23 = scalar_select %p376_p11, %s932_s12, 1 }
  0x17   : > { %860 = vset.pattern.permute.xlu1 %v942_v2  ;;  %859 = vset.pattern.permute.xlu0 %v942_v2  ;;  %v394_v3 = vld [vmem:[%s1193_s2] sm:$0xff]  ;;  %v779_v5 = vld [vmem:[%s1192_s1 + $0x8] sm:$0xff]  ;;  %v783_v9 = vld [vmem:[%s1198_s7 + $0x10] sm:$0xff] }
  0x18   : > { %418 = vperm.xlu1 %860, %v780_v0   ;;  %399 = vperm.xlu0 %859, %v396_v1   ;;  %v395_v6 = vld [vmem:[%s1197_s6] sm:$0xff]  ;;  %v782_v10 = vld [vmem:[%s1198_s7 + $0x8] sm:$0xff]  ;;  %s1085_s24 = sshll.u32 %s377_s23, 3  ;;  %v784_v45 = vld [vmem:[%s1198_s7 + $0x18] sm:$0xff]  ;;  %s666_s23 = scalar_lea.hbm %s1200_s9, %s798_s16 }
  0x19   : > { %861 = vset.pattern.permute.xlu2 %v942_v2  ;;  %v462_v7 = vld [vmem:[%s1198_s7] sm:$0xff]  ;;  %s381_s27 = scalar_lea.vmem %s1204_s0, %s1085_s24  ;;  %v786_v46 = vld [vmem:[%s1198_s7 + $0x28] sm:$0xff]  ;;  %v792_v47 = vld [vmem:[%s1198_s7 + $0x58] sm:$0xff]  ;;  %s385_s26 = scalar_lea.vmem %s1195_s4, %s1085_s24 }
  0x1a   : > { %436 = vperm.xlu2 %861, %v394_v3   ;;  %v393_v8 = vld [vmem:[%s1194_s3] sm:$0xff]  ;;  %v787_v48 = vld [vmem:[%s1198_s7 + $0x30] sm:$0xff]  ;;  %v788_v50 = vld [vmem:[%s1198_s7 + $0x38] sm:$0xff] }
  0x1b   : > { %v785_v11 = vld [vmem:[%s1198_s7 + $0x20] sm:$0xff]  ;;  %v795_v49 = vld [vmem:[%s1198_s7 + $0x70] sm:$0xff]  ;;  %v790_v51 = vld [vmem:[%s1198_s7 + $0x48] sm:$0xff] }
  0x1c   : > { %v1091_v14 = vld [vmem:[%s381_s27] sm:$0xff]  ;;  %v791_v52 = vld [vmem:[%s1198_s7 + $0x50] sm:$0xff]  ;;  %v794_v54 = vld [vmem:[%s1198_s7 + $0x68] sm:$0xff] }
  0x1d   : > { %v402_v15 = vperm.slane %v1091_v14, 0  ;;  %v540_v16 = vperm.slane %v1091_v14, 4  ;;  %v411_v17 = vperm.slane %v1091_v14, 1  ;;  %v542_v18 = vperm.slane %v1091_v14, 5  ;;  %v789_v44 = vld [vmem:[%s1198_s7 + $0x40] sm:$0xff]  ;;  %v796_v55 = vld [vmem:[%s1198_s7 + $0x78] sm:$0xff] }
  0x1e   : > { %v421_v19 = vperm.slane %v1091_v14, 2  ;;  %v545_v20 = vperm.slane %v1091_v14, 6  ;;  %v431_v21 = vperm.slane %v1091_v14, 3  ;;  %v548_v22 = vperm.slane %v1091_v14, 7  ;;  %v793_v53 = vld [vmem:[%s1198_s7 + $0x60] sm:$0xff] }
  0x1f   : > { %v644_v56 = vld [vmem:[%s1199_s8] sm:$0xff] }
  0x20   : > { %428 = vperm.xlu1 %860, %v781_v4   ;;  %408 = vperm.xlu0 %859, %v779_v5   ;;  %v391_v62 = vld [vmem:[%s385_s26] sm:$0xff]  ;;  %s670_s26 = sshll.u32 %s666_s23, 4  ;;  %s671_s26 = int_to_ptr.hbm [resolvable:$true] %s670_s26 }
  0x22   : > { %457 = vperm.xlu2 %861, %v395_v6  }
  0x28   : > { %465 = vperm.xlu0 %859, %v462_v7   ;;  %448 = vperm.xlu1 %860, %v393_v8  }
  0x2a   : > { %484 = vperm.xlu2 %861, %v783_v9  }
  0x30   : > { %474 = vperm.xlu1 %860, %v782_v10  }
  0x38   : > { %504 = vperm.xlu1 %860, %v785_v11  }
  0x74   : > { %v437_v39 = vpop.permute.xlu2 %436 }
  0x7c   : > { %v458_v57 = vpop.permute.xlu2 %457 }
  0x84   : > { %v485_v59 = vpop.permute.xlu2 %484 }
  0x8a   : > { %v419_v12 = vpop.permute.xlu1 %418  ;;  %v400_v13 = vpop.permute.xlu0 %399 }
  0x8b   : > { %v403_v24 = vmul.f32 %v402_v15, %v400_v13  ;;  %v541_v25 = vmul.f32 %v540_v16, %v400_v13  ;;  %v422_v29 = vmul.f32 %v421_v19, %v419_v12  ;;  %v546_v30 = vmul.f32 %v545_v20, %v419_v12 }
  0x92   : > { %v409_v23 = vpop.permute.xlu0 %408  ;;  %v429_v28 = vpop.permute.xlu1 %428 }
  0x93   : > { %v412_v26 = vmul.f32 %v411_v17, %v409_v23  ;;  %v543_v27 = vmul.f32 %v542_v18, %v409_v23  ;;  %v432_v33 = vmul.f32 %v431_v21, %v429_v28  ;;  %v549_v34 = vmul.f32 %v548_v22, %v429_v28 }
  0x95   : > { %v413_v31 = vadd.f32 %v412_v26, %v403_v24  ;;  %v544_v32 = vadd.f32 %v543_v27, %v541_v25 }
  0x97   : > { %v423_v35 = vadd.f32 %v422_v29, %v413_v31  ;;  %v547_v36 = vadd.f32 %v546_v30, %v544_v32 }
  0x99   : > { %v433_v37 = vadd.f32 %v432_v33, %v423_v35  ;;  %v550_v38 = vadd.f32 %v549_v34, %v547_v36 }
  0x9a   : > { %v449_v58 = vpop.permute.xlu1 %448  ;;  %v466_v60 = vpop.permute.xlu0 %465 }
  0x9b   : > { %v439_v40 = vadd.f32 %v437_v39, %v433_v37  ;;  %v551_v41 = vadd.f32 %v550_v38, %v437_v39 }
  0x9d   : > { %v440_v42 = vmax.f32 %v439_v40, 0.0  ;;  %v1101_v43 = vmax.f32 %v551_v41, 0.0 }
  0x9f   : > { %555 = vrot.lane.b32.xlu1 %v1101_v43, %s943_s28  ;;  %443 = vrot.lane.b32.xlu0 %v440_v42, %s943_s28  ;;  %s389_s28 = scalar_lea.vmem %s1196_s5, %s1085_s24  ;;  %v451_v2 = vmul.f32 %v449_v58, %v440_v42  ;;  %v558_v26 = vmul.f32 %v1101_v43, %v449_v58  ;;  %s371_s24 = sand.u32 1, %s924_s10  }
  0xa0   : > { %441 = vrot.lane.b32.xlu2 %v440_v42, %s944_s29  ;;  %v392_v1 = vld [vmem:[%s389_s28] sm:$0xff]  ;;  %s775_s15 = sshll.u32 %s371_s24, 3  ;;  %s654_s12 = scalar_lea.sflag [#allocation3], %s371_s24 }
  0xa1   : > { %s373_s25 = scalar_lea.vmem [#allocation2], %s775_s15  ;;  %s882_s15 = scalar_lea.hbm %s1200_s9, 16 }
  0xa2   : > { %v475_v61 = vpop.permute.xlu1 %474  ;;  %s668_s0 = sshll.u32 %s373_s25, 4  ;;  %s669_s0 = int_to_ptr.vmem [resolvable:$true] %s668_s0 }
  0xa7   : > { %568 = vperm.xlu1 %860, %v789_v44   ;;  %494 = vperm.xlu0 %859, %v784_v45  }
  0xa8   : > { %514 = vperm.xlu2 %861, %v786_v46  }
  0xaa   : > { %v505_v7 = vpop.permute.xlu1 %504 }
  0xaf   : > { %598 = vperm.xlu1 %860, %v792_v47   ;;  %553 = vrot.lane.b32.xlu0 %v1101_v43, %s944_s29  ;;  %s876_s29 = sshra.s32 %s671_s26, 4  ;;  %s877_s29 = int_to_ptr.hbm [resolvable:$true] %s876_s29 }
  0xb0   : > { %524 = vperm.xlu2 %861, %v787_v48   ;;  %s878_s27 = scalar_lea.hbm %s877_s29, 8  ;;  %p883_p1 = scmp.lt.s32.totalorder %s877_s29, %s1200_s9 }
  0xb1   : > { %p879_p12 = scmp.ne.s32.totalorder %s877_s29, %s878_s27  ;;  %p884_p2 = scmp.lt.s32.totalorder %s882_s15, %s878_s27 }
  0xb3   : > { %p880_p13 = pnand %p879_p12, %p1035_p4  ;;  %p885_p3 = por %p884_p2, %p883_p1 }
  0xb5   : > { %p881_p0 = pneg %p880_p13 }
  0xb7   : > { %628 = vperm.xlu1 %860, %v795_v49   ;;  %534 = vperm.xlu0 %859, %v788_v50   ;;  %p886_p5 = pnand %p885_p3, %p881_p0 }
  0xb8   : > { %578 = vperm.xlu2 %861, %v790_v51  }
  0xbf   : > { %588 = vperm.xlu0 %859, %v791_v52  }
  0xc0   : > { %608 = vperm.xlu2 %861, %v793_v53  }
  0xc7   : > { %618 = vperm.xlu0 %859, %v794_v54  }
  0xc8   : > { %638 = vperm.xlu2 %861, %v796_v55  }
  0xcf   : > { %647 = vperm.xlu0 %859, %v644_v56  }
  0xfa   : > { %v442_v63 = vpop.permute.xlu2 %441 }
  0xfb   : > { %v445_v0 = vmul.f32 %v442_v63, %v391_v62 }
  0xfd   : > { %v452_v4 = vadd.f32 %v451_v2, %v445_v0 }
 0x102   : > { %v515_v8 = vpop.permute.xlu2 %514 }
 0x10a   : > { %v525_v23 = vpop.permute.xlu2 %524 }
 0x111   : > { %v444_v3 = vpop.permute.xlu0 %443  ;;  %v556_v19 = vpop.permute.xlu1 %555 }
 0x112   : > { %v453_v5 = vmul.f32 %v444_v3, %v392_v1  ;;  %v560_v32 = vmul.f32 %v556_v19, %v392_v1  ;;  %v579_v42 = vpop.permute.xlu2 %578 }
 0x114   : > { %v454_v6 = vadd.f32 %v453_v5, %v452_v4 }
 0x116   : > { %v460_v9 = vadd.f32 %v458_v57, %v454_v6 }
 0x118   : > { %v461_v10 = vmax.f32 %v460_v9, 0.0 }
 0x119   : > { %v495_v11 = vpop.permute.xlu0 %494  ;;  %v569_v38 = vpop.permute.xlu1 %568 }
 0x11a   : > { %v468_v12 = vperm.slane %v461_v10, 0  ;;  %v477_v13 = vperm.slane %v461_v10, 1  ;;  %v487_v15 = vperm.slane %v461_v10, 2  ;;  %v497_v18 = vperm.slane %v461_v10, 3 }
 0x11b   : > { %v507_v22 = vperm.slane %v461_v10, 4  ;;  %v517_v31 = vperm.slane %v461_v10, 5  ;;  %v527_v37 = vperm.slane %v461_v10, 6  ;;  %v537_v41 = vperm.slane %v461_v10, 7 }
 0x11c   : > { %v469_v16 = vmul.f32 %v468_v12, %v466_v60  ;;  %v478_v17 = vmul.f32 %v477_v13, %v475_v61  ;;  %v488_v21 = vmul.f32 %v487_v15, %v485_v59  ;;  %v498_v25 = vmul.f32 %v497_v18, %v495_v11  ;;  %v609_v61 = vpop.permute.xlu2 %608 }
 0x11d   : > { %v508_v29 = vmul.f32 %v507_v22, %v505_v7  ;;  %v518_v36 = vmul.f32 %v517_v31, %v515_v8  ;;  %v528_v46 = vmul.f32 %v527_v37, %v525_v23 }
 0x11e   : > { %v479_v20 = vadd.f32 %v478_v17, %v469_v16 }
 0x120   : > { %v489_v24 = vadd.f32 %v488_v21, %v479_v20 }
 0x121   : > { %v554_v27 = vpop.permute.xlu0 %553  ;;  %v599_v56 = vpop.permute.xlu1 %598 }
 0x122   : > { %v499_v28 = vadd.f32 %v498_v25, %v489_v24  ;;  %v557_v30 = vmul.f32 %v554_v27, %v391_v62 }
 0x124   : > { %v509_v33 = vadd.f32 %v508_v29, %v499_v28  ;;  %v559_v34 = vadd.f32 %v558_v26, %v557_v30  ;;  %v639_v11 = vpop.permute.xlu2 %638 }
 0x126   : > { %v561_v35 = vadd.f32 %v560_v32, %v559_v34  ;;  %v519_v40 = vadd.f32 %v518_v36, %v509_v33 }
 0x128   : > { %v562_v39 = vadd.f32 %v561_v35, %v458_v57  ;;  %v529_v48 = vadd.f32 %v528_v46, %v519_v40 }
 0x129   : > { %v535_v44 = vpop.permute.xlu0 %534  ;;  %v629_v8 = vpop.permute.xlu1 %628 }
 0x12a   : > { %v563_v45 = vmax.f32 %v562_v39, 0.0  ;;  %v538_v43 = vmul.f32 %v537_v41, %v535_v44 }
 0x12c   : > { %v571_v47 = vperm.slane %v563_v45, 0  ;;  %v581_v49 = vperm.slane %v563_v45, 1  ;;  %v539_v51 = vadd.f32 %v538_v43, %v529_v48  ;;  %v591_v53 = vperm.slane %v563_v45, 2 }
 0x12d   : > { %v601_v54 = vperm.slane %v563_v45, 3  ;;  %v611_v60 = vperm.slane %v563_v45, 4  ;;  %v631_v2 = vperm.slane %v563_v45, 6  ;;  %v621_v3 = vperm.slane %v563_v45, 5 }
 0x12e   : > { %v572_v50 = vmul.f32 %v571_v47, %v569_v38  ;;  %v582_v55 = vmul.f32 %v581_v49, %v579_v42  ;;  %v641_v6 = vperm.slane %v563_v45, 7 }
 0x12f   : > { %v602_v62 = vmul.f32 %v601_v54, %v599_v56  ;;  %v612_v1 = vmul.f32 %v611_v60, %v609_v61  ;;  %v632_v9 = vmul.f32 %v631_v2, %v629_v8 }
 0x130   : > { %v573_v52 = vadd.f32 %v572_v50, %v539_v51  ;;  %v642_v12 = vmul.f32 %v641_v6, %v639_v11 }
 0x131   : > { %v589_v58 = vpop.permute.xlu0 %588 }
 0x132   : > { %v583_v57 = vadd.f32 %v582_v55, %v573_v52  ;;  %v592_v59 = vmul.f32 %v591_v53, %v589_v58 }
 0x134   : > { %v593_v63 = vadd.f32 %v592_v59, %v583_v57 }
 0x136   : > { %v603_v0 = vadd.f32 %v602_v62, %v593_v63 }
 0x138   : > { %v613_v4 = vadd.f32 %v612_v1, %v603_v0 }
 0x139   : > { %v619_v5 = vpop.permute.xlu0 %618 }
 0x13a   : > { %v622_v7 = vmul.f32 %v621_v3, %v619_v5 }
 0x13c   : > { %v623_v10 = vadd.f32 %v622_v7, %v613_v4 }
 0x13e   : > { %v633_v13 = vadd.f32 %v632_v9, %v623_v10 }
 0x140   : > { %v643_v15 = vadd.f32 %v642_v12, %v633_v13 }
 0x141   : > { %v648_v16 = vpop.permute.xlu0 %647 }
 0x142   : > { %v650_v17 = vadd.f32 %v648_v16, %v643_v15 }
 0x144   : > { %v651_v18 = vadd.f32 %v650_v17, %v1091_v14 }
 0x146   : > { %652 = vst [vmem:[%s373_s25] sm:$0xff] %v651_v18 }
 0x147   : > { %889 = shalt.err (!%p886_p5)
}
 0x148   : > { %801 = dma.vmem_to_hbm [thread:$0]  (%p1035_p4), %s669_s0, 128, %s671_s26, %s654_s12  }
 0x149 PF: > { %p807_p6 = scmp.ge.s32.totalorder %s940_s14, 2  ;;  %s682_s24 = sand.u32 1, %s920_s30  }
 0x14a   : > { %s683_s23 = scalar_lea.sflag [#allocation3], %s682_s24 }
 0x14b   : > { %p804_p7 = pnand %p807_p6, %p1042_p8 }
 0x14d   : > { %p805_p9 = pneg %p804_p7 }
 0x14f   : > { %915 = dma.done.wait (%p805_p9), %s683_s23, 128  }
 0x150   : > { %917 = vsyncadd (%p805_p9), %s683_s23, 4294967168  ;;  %s22_s14 = sadd.s32 1, %s940_s14   ;;  %s1205_s30 = smov %s924_s10 }
 0x151   : > { %p19_p10 = scmp.ge.s32.totalorder %s22_s14, 4   ;;  %s1206_s10 = smov %s928_s11 }
 0x152   : > { %s1207_s11 = smov %s1048_s22  ;;  %s1208_s12 = smov %s936_s13 }
 0x153   : > { %s1209_s13 = smov %s1211_s17  ;;  %21 = sbr.rel (!%p19_p10) target bundleno = 6 (0x6), region = 115 }
 0x158   :  { %689 = vsyncpa [#allocation3], 1 }
 0x159   :  { %691 = vsyncpa [#allocation3 + $0x1], 1 }

</bundles_post_ra>
